<compile_context>
chip_gen: v5e
topology: v5e:2x2
jax: 0.10.0
libtpu: 0.0.40
codegen_flags: <defaults>
</compile_context>

<pallas_src>
import functools

import jax
import jax.numpy as jnp
from jax import lax
from jax.experimental import pallas as pl
from jax.experimental.pallas import tpu as pltpu


def _round_up(n, m):
    return ((n + m - 1) // m) * m


def rnn_seq_kernel(x_ref, h0_ref, wx_ref, wh_ref, b_ref,
                   out_ref, hfin_ref, h_carry, z_scratch,
                   *, tile_t, t_real):
    """One grid step == TILE_T RNN timesteps.

    The hidden state lives in `h_carry` (f32 VMEM scratch) and persists across
    grid steps.  `z_scratch` holds the packed pre-activations [hidden | logits]
    for every timestep of the current tile.
    """
    g = pl.program_id(0)
    b_pad, h_pad = h_carry.shape
    c_pad = z_scratch.shape[-1]
    i_pad = x_ref.shape[-1]

    @pl.when(g == 0)
    def _():
        h_carry[...] = h0_ref[...]

    # ---- Hoisted input projection: one lane-dense GEMM for the whole tile ----
    # (TILE_T*B_pad, I_pad) @ (I_pad, C_pad): this half of the FLOPs has no
    # serial dependence on h, so it runs as a single well-utilized MXU matmul.
    x2 = x_ref[...].reshape(tile_t * b_pad, i_pad)
    zx = jnp.dot(x2, wx_ref[...], preferred_element_type=jnp.float32)
    z_scratch[...] = (zx + b_ref[...]).reshape(tile_t, b_pad, c_pad)

    # ---- Serial recurrence: only h @ Wh remains on the critical path ----
    wh = wh_ref[...]

    def step(i, h):
        z = z_scratch[i] + jnp.dot(h.astype(wh.dtype), wh,
                                   preferred_element_type=jnp.float32)
        z_scratch[i] = z                      # logits consumed after the loop
        h_new = z[:, :h_pad]                  # padded hidden lanes stay 0
        valid = (g * tile_t + i) < t_real     # mask padded tail timesteps
        return jnp.where(valid, h_new, h)

    h_last = lax.fori_loop(0, tile_t, step, h_carry[...], unroll=True)
    h_carry[...] = h_last
    # (Padded batch rows of h pick up the bias after step 0; this is harmless
    #  because every op is row-independent and the wrapper slices them off.)

    # ---- Batched epilogue: log_softmax over the whole tile, f32 (v5e-safe) ----
    z_all = z_scratch[...]
    logits = z_all[:, :, h_pad:]              # padded class lanes == -1e30
    m = jnp.max(logits, axis=-1, keepdims=True)
    shifted = logits - m
    lse = jnp.log(jnp.sum(jnp.exp(shifted), axis=-1, keepdims=True))
    out_ref[...] = (shifted - lse).astype(out_ref.dtype)

    @pl.when(g == pl.num_programs(0) - 1)
    def _():
        hfin_ref[...] = h_last.astype(hfin_ref.dtype)


def prepare_params(w_i2h, b_i2h, w_i2o, b_i2o, input_size,
                   matmul_dtype=jnp.bfloat16):
    """Pack/pad the PyTorch-layout weights ONCE (outside the per-call path).

    w_i2h: [H, I+H], b_i2h: [H], w_i2o: [O, I+H], b_i2o: [O]  (nn.Linear layout).
    Returns (Wx [I_pad, C_pad], Wh [H_pad, C_pad], bias [1, C_pad] (f32), dims),
    where C_pad = H_pad + O_pad and the packed output columns are [hidden|logits].
    """
    hidden_size = w_i2h.shape[0]
    output_size = w_i2o.shape[0]
    assert w_i2h.shape[1] == input_size + hidden_size

    i_pad = _round_up(input_size, 128)
    h_pad = _round_up(hidden_size, 128)
    o_pad = _round_up(output_size, 128)
    c_pad = h_pad + o_pad

    wx = jnp.zeros((i_pad, c_pad), jnp.float32)
    wx = wx.at[:input_size, :hidden_size].set(w_i2h[:, :input_size].T)
    wx = wx.at[:input_size, h_pad:h_pad + output_size].set(w_i2o[:, :input_size].T)

    wh = jnp.zeros((h_pad, c_pad), jnp.float32)
    wh = wh.at[:hidden_size, :hidden_size].set(w_i2h[:, input_size:].T)
    wh = wh.at[:hidden_size, h_pad:h_pad + output_size].set(w_i2o[:, input_size:].T)

    b = jnp.zeros((1, c_pad), jnp.float32)
    b = b.at[0, :hidden_size].set(b_i2h)
    b = b.at[0, h_pad:h_pad + output_size].set(b_i2o)
    # Padded class lanes: huge negative bias -> exp() underflows to 0, so the
    # log_softmax over the full 128-lane block is exact for the real classes.
    b = b.at[0, h_pad + output_size:].set(-1e30)

    dims = dict(I=input_size, H=hidden_size, O=output_size,
                I_pad=i_pad, H_pad=h_pad, O_pad=o_pad, dtype=matmul_dtype)
    return wx.astype(matmul_dtype), wh.astype(matmul_dtype), b, dims


def rnn_forward_sequence(x_seq, h0, packed, *, tile_t=None,
                         out_dtype=jnp.float32):
    """Run T timesteps of the RNN cell inside ONE pallas_call.

    x_seq: [T, B, input_size], h0: [B, hidden_size].
    Returns (log_probs [T, B, output_size] in out_dtype, final_hidden [B, H]).
    (Pass out_dtype=jnp.bfloat16 to halve output writeback bytes if downstream
     consumers tolerate it; internal log_softmax math stays f32 either way.)"""
    wx, wh, b, dims = packed
    T, B, I = x_seq.shape
    H, O = dims["H"], dims["O"]
    I_pad, H_pad, O_pad = dims["I_pad"], dims["H_pad"], dims["O_pad"]
    C_pad = H_pad + O_pad
    mdt = dims["dtype"]

    # dtype-aware sublane packing: 8 rows for 4-byte, 16 for 2-byte operands.
    sublane = 8 * (4 // jnp.dtype(mdt).itemsize)
    B_pad = _round_up(B, sublane)

    if tile_t is None:
        tile_t = min(T, 16)          # amortize ~0.35 us per-grid-step overhead
    T_pad = _round_up(T, tile_t)

    # Pad time to a multiple of the tile, batch to full sublane packing, and
    # features to full 128-lane tiles.
    xp = jnp.zeros((T_pad, B_pad, I_pad), mdt).at[:T, :B, :I].set(x_seq.astype(mdt))
    hp = jnp.zeros((B_pad, H_pad), jnp.float32).at[:B, :H].set(h0.astype(jnp.float32))

    kernel = functools.partial(rnn_seq_kernel, tile_t=tile_t, t_real=T)

    logp_p, hfin_p = pl.pallas_call(
        kernel,
        out_shape=(
            jax.ShapeDtypeStruct((T_pad, B_pad, O_pad), out_dtype),   # log-probs
            jax.ShapeDtypeStruct((B_pad, H_pad), jnp.float32),        # final hidden
        ),
        grid_spec=pltpu.PrefetchScalarGridSpec(
            num_scalar_prefetch=0,
            grid=(T_pad // tile_t,),
            in_specs=[
                pl.BlockSpec((tile_t, B_pad, I_pad), lambda g: (g, 0, 0)),  # x tile
                pl.BlockSpec((B_pad, H_pad), lambda g: (0, 0)),             # h0   (resident)
                pl.BlockSpec((I_pad, C_pad), lambda g: (0, 0)),             # Wx   (resident)
                pl.BlockSpec((H_pad, C_pad), lambda g: (0, 0)),             # Wh   (resident)
                pl.BlockSpec((1, C_pad), lambda g: (0, 0)),                 # bias (resident)
            ],
            out_specs=[
                pl.BlockSpec((tile_t, B_pad, O_pad), lambda g: (g, 0, 0)),  # log-probs tile
                pl.BlockSpec((B_pad, H_pad), lambda g: (0, 0)),             # final hidden
            ],
            scratch_shapes=[
                pltpu.VMEM((B_pad, H_pad), jnp.float32),          # hidden carry
                pltpu.VMEM((tile_t, B_pad, C_pad), jnp.float32),  # per-tile z
            ],
        ),
        compiler_params=pltpu.CompilerParams(
            dimension_semantics=("arbitrary",)),   # time is inherently sequential
    )(xp, hp, wx, wh, b)

    return logp_p[:T, :B, :O], hfin_p[:B, :H]


def rnn_forward(x, h, packed):
    """Single step, matching RNN.forward:
    returns (log_softmax(i2o(cat(x, h))), i2h(cat(x, h)))."""
    logp, h_new = rnn_forward_sequence(x[None], h, packed)
    return logp[0], h_new


if __name__ == "__main__":
    batch = 2
    input_size = 16
    hidden_size = 32
    output_size = 8
    seq_len = 8

    key = jax.random.PRNGKey(0)
    k1, k2, k3, k4, k5, k6 = jax.random.split(key, 6)

    # PyTorch nn.Linear default init: U(-1/sqrt(fan_in), 1/sqrt(fan_in))
    fan_in = input_size + hidden_size
    bound = 1.0 / float(fan_in) ** 0.5
    w_i2h = jax.random.uniform(k1, (hidden_size, fan_in), jnp.float32, -bound, bound)
    b_i2h = jax.random.uniform(k2, (hidden_size,), jnp.float32, -bound, bound)
    w_i2o = jax.random.uniform(k3, (output_size, fan_in), jnp.float32, -bound, bound)
    b_i2o = jax.random.uniform(k4, (output_size,), jnp.float32, -bound, bound)

    x_seq = jax.random.normal(k5, (seq_len, batch, input_size), jnp.float32)
    h0 = jax.random.normal(k6, (batch, hidden_size), jnp.float32)

    # Pure-JAX reference (mirrors the PyTorch module exactly).
    def ref_step(h, x):
        comb = jnp.concatenate([x, h], axis=1)
        hid = comb @ w_i2h.T + b_i2h
        logits = comb @ w_i2o.T + b_i2o
        return hid, jax.nn.log_softmax(logits, axis=1)

    ref_h1, ref_logp1 = ref_step(h0, x_seq[0])
    h = h0
    ref_logps = []
    for t in range(seq_len):
        h, lp = ref_step(h, x_seq[t])
        ref_logps.append(lp)
    ref_logp_seq = jnp.stack(ref_logps, axis=0)
    ref_h_final = h

    # --- exactness check: f32 operands ---
    packed_f32 = prepare_params(w_i2h, b_i2h, w_i2o, b_i2o, input_size,
                                matmul_dtype=jnp.float32)
    logp1, h1 = rnn_forward(x_seq[0], h0, packed_f32)
    logp_seq, h_final = rnn_forward_sequence(x_seq, h0, packed_f32)
    jax.block_until_ready((logp1, h1, logp_seq, h_final))
    assert jnp.allclose(h1, ref_h1, atol=2e-5), "f32 single-step hidden mismatch"
    assert jnp.allclose(logp1, ref_logp1, atol=2e-5), "f32 single-step log_softmax mismatch"
    assert jnp.allclose(h_final, ref_h_final, atol=5e-5), "f32 sequence final-hidden mismatch"
    assert jnp.allclose(logp_seq, ref_logp_seq, atol=5e-5), "f32 sequence log_softmax mismatch"

    # --- fast path: bf16 operands (default on all TPU generations),
    #     f32 accumulation + f32 epilogue ---
    packed_bf16 = prepare_params(w_i2h, b_i2h, w_i2o, b_i2o, input_size)
    logp_seq_b, h_final_b = rnn_forward_sequence(x_seq, h0, packed_bf16)
    jax.block_until_ready((logp_seq_b, h_final_b))
    # bf16 operands round-trip the hidden state through bf16 each step, so the
    # comparison tolerance is necessarily looser than the f32 exactness check.
    assert jnp.allclose(h_final_b, ref_h_final, atol=1e-1), "bf16 final-hidden mismatch"
    assert jnp.allclose(logp_seq_b, ref_logp_seq, atol=1e-1), "bf16 log_softmax mismatch"

    print("KERNEL_OK")
</pallas_src>

<mosaic_0001>
module attributes {stable_mosaic.version = 11 : i64} {
  func.func @rnn_seq_kernel(%arg0: i32, %arg1: memref<1x8x128xf32, #tpu.memory_space<vmem>>, %arg2: memref<8x128xf32, #tpu.memory_space<vmem>>, %arg3: memref<128x256xf32, #tpu.memory_space<vmem>>, %arg4: memref<128x256xf32, #tpu.memory_space<vmem>>, %arg5: memref<1x256xf32, #tpu.memory_space<vmem>>, %arg6: memref<1x8x128xf32, #tpu.memory_space<vmem>>, %arg7: memref<8x128xf32, #tpu.memory_space<vmem>>, %arg8: memref<8x128xf32, #tpu.memory_space<vmem>>, %arg9: memref<1x8x256xf32, #tpu.memory_space<vmem>>) attributes {dimension_semantics = [#tpu.dimension_semantics<arbitrary>], iteration_bounds = array<i64: 1>, scalar_prefetch = 0 : i64, scratch_operands = 2 : i64, tpu.core_type = #tpu.core_type<tc>, window_params = [{transform_indices = @transform_0, window_bounds = array<i64: 1, 8, 128>}, {pipeline_mode = #tpu.pipeline_mode<synchronous>, transform_indices = @transform_1, window_bounds = array<i64: 8, 128>}, {pipeline_mode = #tpu.pipeline_mode<synchronous>, transform_indices = @transform_2, window_bounds = array<i64: 128, 256>}, {pipeline_mode = #tpu.pipeline_mode<synchronous>, transform_indices = @transform_3, window_bounds = array<i64: 128, 256>}, {pipeline_mode = #tpu.pipeline_mode<synchronous>, transform_indices = @transform_4, window_bounds = array<i64: 1, 256>}, {transform_indices = @transform_5, window_bounds = array<i64: 1, 8, 128>}, {pipeline_mode = #tpu.pipeline_mode<synchronous>, transform_indices = @transform_6, window_bounds = array<i64: 8, 128>}]} {
    %c0_i32 = arith.constant 0 : i32
    %0 = arith.cmpi eq, %arg0, %c0_i32 : i32
    %1 = arith.extui %0 : i1 to i32
    %c0_i32_0 = arith.constant 0 : i32
    %2 = arith.cmpi ne, %1, %c0_i32_0 : i32
    scf.if %2 {
      %c0_34 = arith.constant 0 : index
      %c0_35 = arith.constant 0 : index
      %45 = vector.load %arg2[%c0_34, %c0_35] : memref<8x128xf32, #tpu.memory_space<vmem>>, vector<8x128xf32>
      %c0_36 = arith.constant 0 : index
      %c0_37 = arith.constant 0 : index
      %46 = vector.load %arg8[%c0_36, %c0_37] : memref<8x128xf32, #tpu.memory_space<vmem>>, vector<8x128xf32>
      tpu.vector_store %arg8[%c0_36, %c0_37], %45 {strides = array<i32>} : memref<8x128xf32, #tpu.memory_space<vmem>>, vector<8x128xf32>,
    } else {
    }
    %c0 = arith.constant 0 : index
    %c0_1 = arith.constant 0 : index
    %c0_2 = arith.constant 0 : index
    %3 = vector.load %arg1[%c0, %c0_1, %c0_2] : memref<1x8x128xf32, #tpu.memory_space<vmem>>, vector<1x8x128xf32>
    %4 = vector.shape_cast %3 : vector<1x8x128xf32> to vector<8x128xf32>
    %c0_3 = arith.constant 0 : index
    %c0_4 = arith.constant 0 : index
    %5 = vector.load %arg3[%c0_3, %c0_4] : memref<128x256xf32, #tpu.memory_space<vmem>>, vector<128x256xf32>
    %cst = arith.constant dense<0.000000e+00> : vector<8x256xf32>
    %6 = tpu.matmul %4, %5, %cst {dimension_numbers = #tpu.dot_dimension_numbers<[1], [0], [0], [1], [0, 0, 1, 1], [], []>} : vector<8x128xf32>, vector<128x256xf32>, vector<8x256xf32> -> vector<8x256xf32>
    %c0_5 = arith.constant 0 : index
    %c0_6 = arith.constant 0 : index
    %7 = vector.load %arg5[%c0_5, %c0_6] : memref<1x256xf32, #tpu.memory_space<vmem>>, vector<1x256xf32>
    %8 = vector.broadcast %7 : vector<1x256xf32> to vector<8x256xf32>
    %9 = arith.addf %6, %8 : vector<8x256xf32>
    %10 = vector.shape_cast %9 : vector<8x256xf32> to vector<1x8x256xf32>
    %c0_7 = arith.constant 0 : index
    %c0_8 = arith.constant 0 : index
    %c0_9 = arith.constant 0 : index
    %11 = vector.load %arg9[%c0_7, %c0_8, %c0_9] : memref<1x8x256xf32, #tpu.memory_space<vmem>>, vector<1x8x256xf32>
    tpu.vector_store %arg9[%c0_7, %c0_8, %c0_9], %10 {strides = array<i32>} : memref<1x8x256xf32, #tpu.memory_space<vmem>>, vector<1x8x256xf32>,
    %c0_10 = arith.constant 0 : index
    %c0_11 = arith.constant 0 : index
    %12 = vector.load %arg4[%c0_10, %c0_11] : memref<128x256xf32, #tpu.memory_space<vmem>>, vector<128x256xf32>
    %c0_12 = arith.constant 0 : index
    %c0_13 = arith.constant 0 : index
    %13 = vector.load %arg8[%c0_12, %c0_13] : memref<8x128xf32, #tpu.memory_space<vmem>>, vector<8x128xf32>
    %c0_i32_14 = arith.constant 0 : i32
    %14 = arith.index_cast %c0_i32_14 : i32 to index
    %c0_15 = arith.constant 0 : index
    %c0_16 = arith.constant 0 : index
    %15 = vector.load %arg9[%14, %c0_15, %c0_16] : memref<1x8x256xf32, #tpu.memory_space<vmem>>, vector<1x8x256xf32>
    %16 = vector.shape_cast %15 : vector<1x8x256xf32> to vector<8x256xf32>
    %cst_17 = arith.constant dense<0.000000e+00> : vector<8x256xf32>
    %17 = tpu.matmul %13, %12, %cst_17 {dimension_numbers = #tpu.dot_dimension_numbers<[1], [0], [0], [1], [0, 0, 1, 1], [], []>} : vector<8x128xf32>, vector<128x256xf32>, vector<8x256xf32> -> vector<8x256xf32>
    %18 = arith.addf %16, %17 : vector<8x256xf32>
    %19 = arith.index_cast %c0_i32_14 : i32 to index
    %c0_18 = arith.constant 0 : index
    %c0_19 = arith.constant 0 : index
    %20 = vector.load %arg9[%19, %c0_18, %c0_19] : memref<1x8x256xf32, #tpu.memory_space<vmem>>, vector<1x8x256xf32>
    %21 = vector.shape_cast %20 : vector<1x8x256xf32> to vector<8x256xf32>
    %22 = vector.shape_cast %18 : vector<8x256xf32> to vector<1x8x256xf32>
    tpu.vector_store %arg9[%19, %c0_18, %c0_19], %22 {strides = array<i32>} : memref<1x8x256xf32, #tpu.memory_space<vmem>>, vector<1x8x256xf32>,
    %23 = vector.extract_strided_slice %18 {offsets = [0, 0], sizes = [8, 128], strides = [1, 1]} : vector<8x256xf32> to vector<8x128xf32>
    %c1_i32 = arith.constant 1 : i32
    %24 = arith.muli %arg0, %c1_i32 : i32
    %25 = arith.addi %24, %c0_i32_14 : i32
    %c1_i32_20 = arith.constant 1 : i32
    %26 = arith.cmpi slt, %25, %c1_i32_20 : i32
    %27 = arith.select %26, %23, %13 : vector<8x128xf32>
    %c1_i32_21 = arith.constant 1 : i32
    %c0_22 = arith.constant 0 : index
    %c0_23 = arith.constant 0 : index
    %28 = vector.load %arg8[%c0_22, %c0_23] : memref<8x128xf32, #tpu.memory_space<vmem>>, vector<8x128xf32>
    tpu.vector_store %arg8[%c0_22, %c0_23], %27 {strides = array<i32>} : memref<8x128xf32, #tpu.memory_space<vmem>>, vector<8x128xf32>,
    %c0_24 = arith.constant 0 : index
    %c0_25 = arith.constant 0 : index
    %c0_26 = arith.constant 0 : index
    %29 = vector.load %arg9[%c0_24, %c0_25, %c0_26] : memref<1x8x256xf32, #tpu.memory_space<vmem>>, vector<1x8x256xf32>
    %30 = vector.extract_strided_slice %29 {offsets = [0, 0, 128], sizes = [1, 8, 128], strides = [1, 1, 1]} : vector<1x8x256xf32> to vector<1x8x128xf32>
    %cst_27 = arith.constant dense<0xFF800000> : vector<1x8xf32>
    %31 = vector.multi_reduction <maximumf>, %30, %cst_27 [2] : vector<1x8x128xf32> to vector<1x8xf32>
    %32 = vector.shape_cast %31 : vector<1x8xf32> to vector<1x8x1xf32>
    %33 = vector.broadcast %32 : vector<1x8x1xf32> to vector<1x8x128xf32>
    %34 = arith.subf %30, %33 : vector<1x8x128xf32>
    %35 = math.exp %34 : vector<1x8x128xf32>
    %cst_28 = arith.constant dense<0.000000e+00> : vector<1x8xf32>
    %36 = vector.multi_reduction <add>, %35, %cst_28 [2] : vector<1x8x128xf32> to vector<1x8xf32>
    %37 = vector.shape_cast %36 : vector<1x8xf32> to vector<1x8x1xf32>
    %38 = math.log %37 : vector<1x8x1xf32>
    %39 = vector.broadcast %38 : vector<1x8x1xf32> to vector<1x8x128xf32>
    %40 = arith.subf %34, %39 : vector<1x8x128xf32>
    %c0_29 = arith.constant 0 : index
    %c0_30 = arith.constant 0 : index
    %c0_31 = arith.constant 0 : index
    %41 = vector.load %arg6[%c0_29, %c0_30, %c0_31] : memref<1x8x128xf32, #tpu.memory_space<vmem>>, vector<1x8x128xf32>
    tpu.vector_store %arg6[%c0_29, %c0_30, %c0_31], %40 {strides = array<i32>} : memref<1x8x128xf32, #tpu.memory_space<vmem>>, vector<1x8x128xf32>,
    %c0_i32_32 = arith.constant 0 : i32
    %42 = arith.cmpi eq, %arg0, %c0_i32_32 : i32
    %43 = arith.extui %42 : i1 to i32
    %c0_i32_33 = arith.constant 0 : i32
    %44 = arith.cmpi ne, %43, %c0_i32_33 : i32
    scf.if %44 {
      %c0_34 = arith.constant 0 : index
      %c0_35 = arith.constant 0 : index
      %45 = vector.load %arg7[%c0_34, %c0_35] : memref<8x128xf32, #tpu.memory_space<vmem>>, vector<8x128xf32>
      tpu.vector_store %arg7[%c0_34, %c0_35], %27 {strides = array<i32>} : memref<8x128xf32, #tpu.memory_space<vmem>>, vector<8x128xf32>,
    } else {
    }
    return
  }
  func.func @transform_0(%arg0: i32) -> (i32, i32, i32) {
    %c0_i32 = arith.constant 0 : i32
    %c0_i32_0 = arith.constant 0 : i32
    %c0_i32_1 = arith.constant 0 : i32
    return %arg0, %c0_i32, %c0_i32_0 : i32, i32, i32
  }
  func.func @transform_1(%arg0: i32) -> (i32, i32) {
    %c0_i32 = arith.constant 0 : i32
    %c0_i32_0 = arith.constant 0 : i32
    %c0_i32_1 = arith.constant 0 : i32
    return %c0_i32, %c0_i32_0 : i32, i32
  }
  func.func @transform_2(%arg0: i32) -> (i32, i32) {
    %c0_i32 = arith.constant 0 : i32
    %c0_i32_0 = arith.constant 0 : i32
    %c0_i32_1 = arith.constant 0 : i32
    return %c0_i32, %c0_i32_0 : i32, i32
  }
  func.func @transform_3(%arg0: i32) -> (i32, i32) {
    %c0_i32 = arith.constant 0 : i32
    %c0_i32_0 = arith.constant 0 : i32
    %c0_i32_1 = arith.constant 0 : i32
    return %c0_i32, %c0_i32_0 : i32, i32
  }
  func.func @transform_4(%arg0: i32) -> (i32, i32) {
    %c0_i32 = arith.constant 0 : i32
    %c0_i32_0 = arith.constant 0 : i32
    %c0_i32_1 = arith.constant 0 : i32
    return %c0_i32, %c0_i32_0 : i32, i32
  }
  func.func @transform_5(%arg0: i32) -> (i32, i32, i32) {
    %c0_i32 = arith.constant 0 : i32
    %c0_i32_0 = arith.constant 0 : i32
    %c0_i32_1 = arith.constant 0 : i32
    return %arg0, %c0_i32, %c0_i32_0 : i32, i32, i32
  }
  func.func @transform_6(%arg0: i32) -> (i32, i32) {
    %c0_i32 = arith.constant 0 : i32
    %c0_i32_0 = arith.constant 0 : i32
    %c0_i32_1 = arith.constant 0 : i32
    return %c0_i32, %c0_i32_0 : i32, i32
  }
}

</mosaic_0001>

<bundles_post_ra>
// kernel: tpu_custom_call.1
= control target key start
LH: loop header
LB: loop body
LE: loop exit
PB: predicated region body
PF: predicated region fallthrough
CT: control target
= control target key end

     0   :  { %12 = vsyncpa [#allocation5], 0  ;;  %s544_s0 = inlined_call_operand.hbm [shape: f32[1,8,128], index: 0, kind: input, shape index: {}]   ;;  %s545_s1 = inlined_call_operand.hbm [shape: f32[8,128], index: 1, kind: input, shape index: {}]   ;;  %s546_s2 = inlined_call_operand.hbm [shape: f32[128,256], index: 2, kind: input, shape index: {}]   ;;  %s547_s3 = inlined_call_operand.hbm [shape: f32[128,256], index: 3, kind: input, shape index: {}]   ;;  %s548_s4 = inlined_call_operand.vmem [shape: f32[1,256], index: 4, kind: input, shape index: {}]   ;;  %s549_s5 = inlined_call_operand.hbm [shape: f32[1,8,128], index: 5, kind: output, shape index: {0}]   ;;  %s550_s6 = inlined_call_operand.hbm [shape: f32[8,128], index: 6, kind: output, shape index: {1}]  }
   0x1   :  { %13 = vsyncpa [#allocation8], 0 }
   0x2   :  { %14 = vsyncpa [#allocation11], 0 }
   0x3   :  { %15 = vsyncpa [#allocation6], 0  ;;  %s33_s23 = sshll.u32 %s545_s1, 4  ;;  %s34_s23 = int_to_ptr.hbm [resolvable:$true] %s33_s23 }
   0x4   :  { %16 = vsyncpa [#allocation14], 0  ;;  %s472_s24 = smov [#allocation7]   ;;  %s22_s28 = sshll.u32 %s544_s0, 4  ;;  %s23_s28 = int_to_ptr.hbm [resolvable:$true] %s22_s28 }
   0x5   :  { %s35_s25 = sshll.u32 %s472_s24, 4  ;;  %s473_s29 = smov [#allocation4]   ;;  %s36_s25 = int_to_ptr.vmem [resolvable:$true] %s35_s25 }
   0x6   :  { %38 = dma.hbm_to_vmem [thread:$0]  %s34_s23, 128, %s36_s25, [#allocation8]  }
   0x7   :  { %s24_s30 = sshll.u32 %s473_s29, 4  ;;  %s43_s9 = sshll.u32 %s546_s2, 4  ;;  %s25_s30 = int_to_ptr.vmem [resolvable:$true] %s24_s30  ;;  %s44_s9 = int_to_ptr.hbm [resolvable:$true] %s43_s9 }
   0x8   :  { %27 = dma.hbm_to_vmem [thread:$0]  %s23_s28, 128, %s25_s30, [#allocation5]  }
   0x9   :  { %s474_s1 = smov [#allocation9]   ;;  %s56_s13 = sshll.u32 %s547_s3, 4  ;;  %s57_s13 = int_to_ptr.hbm [resolvable:$true] %s56_s13 }
   0xa   :  { %s45_s10 = sshll.u32 %s474_s1, 4  ;;  %s475_s14 = smov 256   ;;  %s46_s10 = int_to_ptr.vmem [resolvable:$true] %s45_s10 }
   0xb   :  { %s476_s0 = smov 16   ;;  %s477_s15 = smov [#allocation10]  }
   0xc   :  { %51 = dma.hbm_to_vmem [thread:$0]  %s44_s9, 4096, %s46_s10, [#allocation8], %s475_s14, %s475_s14, %s476_s0  }
   0xd   :  { %s58_s16 = sshll.u32 %s477_s15, 4  ;;  %s59_s16 = int_to_ptr.vmem [resolvable:$true] %s58_s16 }
   0xe   :  { %64 = dma.hbm_to_vmem [thread:$0]  %s57_s13, 4096, %s59_s16, [#allocation11], %s475_s14, %s475_s14, %s476_s0  }
   0xf   :  { %462 = dma.done.wait [#allocation5], 128  }
  0x10   :  { %463 = vsyncadd [#allocation5], 4294967168 }
  0x11   :  { %464 = dma.done.wait [#allocation8], 4224  }
  0x12   :  { %465 = vsyncadd [#allocation8], 4294963072 }
  0x13   :  { %466 = dma.done.wait [#allocation11], 4096  }
  0x14   :  { %467 = vsyncadd [#allocation11], 4294963200  ;;  %v201_v0 = vld [vmem:[#allocation10 + $0xf8] sm:$0xff]  ;;  %v199_v1 = vld [vmem:[#allocation10 + $0xe8] sm:$0xff]  ;;  %s289_s20 = sshll.u32 %s550_s6, 4  ;;  %s479_s21 = smov [#allocation12]   ;;  %s290_s20 = int_to_ptr.hbm [resolvable:$true] %s289_s20 }
  0x15   :  { %v121_v2 = vld [vmem:[#allocation9 + $0xf8] sm:$0xff]  ;;  %225 = vmatpush.msra.mxu3 %v201_v0  ;;  %v119_v3 = vld [vmem:[#allocation9 + $0xe8] sm:$0xff]  ;;  %v529_v33 = vld [vmem:[#allocation4] sm:$0xff]  ;;  %s276_s22 = sshll.u32 %s479_s21, 4  ;;  %s278_s25 = sshll.u32 %s549_s5, 4  ;;  %s277_s22 = int_to_ptr.vmem [resolvable:$true] %s276_s22  ;;  %s279_s25 = int_to_ptr.hbm [resolvable:$true] %s278_s25 }
  0x16   :  { %148 = vmatpush.msra.mxu1 %v121_v2  ;;  %v197_v4 = vld [vmem:[#allocation10 + $0xd8] sm:$0xff]  ;;  %v195_v6 = vld [vmem:[#allocation10 + $0xc8] sm:$0xff]  ;;  %v200_v34 = vld [vmem:[#allocation10 + $0xf0] sm:$0xff] }
  0x17   :  { %v117_v5 = vld [vmem:[#allocation9 + $0xd8] sm:$0xff]  ;;  %226 = vmatpush.msra.mxu3 %v199_v1  ;;  %v115_v7 = vld [vmem:[#allocation9 + $0xc8] sm:$0xff]  ;;  %v198_v35 = vld [vmem:[#allocation10 + $0xe0] sm:$0xff]  ;;  %205 = vmatpush.msra.mxu2 %v200_v34 }
  0x18   :  { %149 = vmatpush.msra.mxu1 %v119_v3  ;;  %v193_v8 = vld [vmem:[#allocation10 + $0xb8] sm:$0xff]  ;;  %v191_v10 = vld [vmem:[#allocation10 + $0xa8] sm:$0xff]  ;;  %v120_v36 = vld [vmem:[#allocation9 + $0xf0] sm:$0xff] }
  0x19   :  { %227 = vmatpush.msra.mxu3 %v197_v4  ;;  %v113_v9 = vld [vmem:[#allocation9 + $0xb8] sm:$0xff]  ;;  %v111_v11 = vld [vmem:[#allocation9 + $0xa8] sm:$0xff]  ;;  %128 = vmatpush.msra.mxu0 %v120_v36  ;;  %v118_v37 = vld [vmem:[#allocation9 + $0xe0] sm:$0xff] }
  0x1a   :  { %150 = vmatpush.msra.mxu1 %v117_v5  ;;  %v189_v12 = vld [vmem:[#allocation10 + $0x98] sm:$0xff]  ;;  %v187_v14 = vld [vmem:[#allocation10 + $0x88] sm:$0xff]  ;;  %v196_v38 = vld [vmem:[#allocation10 + $0xd0] sm:$0xff]  ;;  %206 = vmatpush.msra.mxu2 %v198_v35 }
  0x1b   :  { %228 = vmatpush.msra.mxu3 %v195_v6  ;;  %v109_v13 = vld [vmem:[#allocation9 + $0x98] sm:$0xff]  ;;  %v107_v15 = vld [vmem:[#allocation9 + $0x88] sm:$0xff]  ;;  %v116_v39 = vld [vmem:[#allocation9 + $0xd0] sm:$0xff]  ;;  %129 = vmatpush.msra.mxu0 %v118_v37 }
  0x1c   :  { %151 = vmatpush.msra.mxu1 %v115_v7  ;;  %v185_v16 = vld [vmem:[#allocation10 + $0x78] sm:$0xff]  ;;  %v183_v18 = vld [vmem:[#allocation10 + $0x68] sm:$0xff]  ;;  %v194_v40 = vld [vmem:[#allocation10 + $0xc0] sm:$0xff]  ;;  %207 = vmatpush.msra.mxu2 %v196_v38 }
  0x1d   :  { %229 = vmatpush.msra.mxu3 %v193_v8  ;;  %v105_v17 = vld [vmem:[#allocation9 + $0x78] sm:$0xff]  ;;  %v103_v19 = vld [vmem:[#allocation9 + $0x68] sm:$0xff]  ;;  %v114_v41 = vld [vmem:[#allocation9 + $0xc0] sm:$0xff]  ;;  %130 = vmatpush.msra.mxu0 %v116_v39 }
  0x1e   :  { %152 = vmatpush.msra.mxu1 %v113_v9  ;;  %v181_v20 = vld [vmem:[#allocation10 + $0x58] sm:$0xff]  ;;  %v179_v22 = vld [vmem:[#allocation10 + $0x48] sm:$0xff]  ;;  %v192_v42 = vld [vmem:[#allocation10 + $0xb0] sm:$0xff]  ;;  %208 = vmatpush.msra.mxu2 %v194_v40 }
  0x1f   :  { %230 = vmatpush.msra.mxu3 %v191_v10  ;;  %v101_v21 = vld [vmem:[#allocation9 + $0x58] sm:$0xff]  ;;  %v99_v23 = vld [vmem:[#allocation9 + $0x48] sm:$0xff]  ;;  %v112_v43 = vld [vmem:[#allocation9 + $0xb0] sm:$0xff]  ;;  %131 = vmatpush.msra.mxu0 %v114_v41 }
  0x20   :  { %153 = vmatpush.msra.mxu1 %v111_v11  ;;  %v177_v24 = vld [vmem:[#allocation10 + $0x38] sm:$0xff]  ;;  %v175_v26 = vld [vmem:[#allocation10 + $0x28] sm:$0xff]  ;;  %v190_v44 = vld [vmem:[#allocation10 + $0xa0] sm:$0xff]  ;;  %209 = vmatpush.msra.mxu2 %v192_v42 }
  0x21   :  { %231 = vmatpush.msra.mxu3 %v189_v12  ;;  %v97_v25 = vld [vmem:[#allocation9 + $0x38] sm:$0xff]  ;;  %v95_v27 = vld [vmem:[#allocation9 + $0x28] sm:$0xff]  ;;  %v110_v45 = vld [vmem:[#allocation9 + $0xa0] sm:$0xff]  ;;  %132 = vmatpush.msra.mxu0 %v112_v43 }
  0x22   :  { %154 = vmatpush.msra.mxu1 %v109_v13  ;;  %v173_v28 = vld [vmem:[#allocation10 + $0x18] sm:$0xff]  ;;  %v171_v30 = vld [vmem:[#allocation10 + $0x8] sm:$0xff]  ;;  %v188_v46 = vld [vmem:[#allocation10 + $0x90] sm:$0xff]  ;;  %210 = vmatpush.msra.mxu2 %v190_v44 }
  0x23   :  { %232 = vmatpush.msra.mxu3 %v187_v14  ;;  %v93_v29 = vld [vmem:[#allocation9 + $0x18] sm:$0xff]  ;;  %v91_v31 = vld [vmem:[#allocation9 + $0x8] sm:$0xff]  ;;  %v108_v47 = vld [vmem:[#allocation9 + $0x90] sm:$0xff]  ;;  %133 = vmatpush.msra.mxu0 %v110_v45 }
  0x24   :  { %155 = vmatpush.msra.mxu1 %v107_v15  ;;  %v527_v32 = vld [vmem:[#allocation7] sm:$0xff]  ;;  %v186_v48 = vld [vmem:[#allocation10 + $0x80] sm:$0xff]  ;;  %211 = vmatpush.msra.mxu2 %v188_v46  ;;  %v184_v50 = vld [vmem:[#allocation10 + $0x70] sm:$0xff] }
  0x25   :  { %233 = vmatpush.msra.mxu3 %v185_v16  ;;  %v106_v49 = vld [vmem:[#allocation9 + $0x80] sm:$0xff]  ;;  %134 = vmatpush.msra.mxu0 %v108_v47  ;;  %v104_v51 = vld [vmem:[#allocation9 + $0x70] sm:$0xff] }
  0x26   :  { %156 = vmatpush.msra.mxu1 %v105_v17  ;;  %212 = vmatpush.msra.mxu2 %v186_v48  ;;  %v182_v52 = vld [vmem:[#allocation10 + $0x60] sm:$0xff]  ;;  %v180_v54 = vld [vmem:[#allocation10 + $0x50] sm:$0xff] }
  0x27   :  { %234 = vmatpush.msra.mxu3 %v183_v18  ;;  %135 = vmatpush.msra.mxu0 %v106_v49  ;;  %v102_v53 = vld [vmem:[#allocation9 + $0x60] sm:$0xff]  ;;  %v100_v55 = vld [vmem:[#allocation9 + $0x50] sm:$0xff] }
  0x28   :  { %157 = vmatpush.msra.mxu1 %v103_v19  ;;  %213 = vmatpush.msra.mxu2 %v184_v50  ;;  %v122_v56 = vld [vmem:[%s548_s4] sm:$0x3]  ;;  %v178_v57 = vld [vmem:[#allocation10 + $0x40] sm:$0xff]  ;;  %s478_s4 = smov [#allocation13]  }
  0x29   :  { %235 = vmatpush.msra.mxu3 %v181_v20  ;;  %136 = vmatpush.msra.mxu0 %v104_v51  ;;  %v98_v58 = vld [vmem:[#allocation9 + $0x40] sm:$0xff]  ;;  %v125_v59 = vperm.slane %v122_v56, 1  ;;  %v176_v60 = vld [vmem:[#allocation10 + $0x30] sm:$0xff]  ;;  %v124_v12 = vperm.slane %v122_v56, 0  ;;  %s287_s17 = sshll.u32 %s478_s4, 4  ;;  %s288_s17 = int_to_ptr.vmem [resolvable:$true] %s287_s17 }
  0x2a   :  { %158 = vmatpush.msra.mxu1 %v101_v21  ;;  %214 = vmatpush.msra.mxu2 %v182_v52  ;;  %v174_v62 = vld [vmem:[#allocation10 + $0x20] sm:$0xff]  ;;  %v96_v2 = vld [vmem:[#allocation9 + $0x30] sm:$0xff] }
  0x2b   :  { %236 = vmatpush.msra.mxu3 %v179_v22  ;;  %137 = vmatpush.msra.mxu0 %v102_v53  ;;  %v172_v3 = vld [vmem:[#allocation10 + $0x10] sm:$0xff]  ;;  %v94_v4 = vld [vmem:[#allocation9 + $0x20] sm:$0xff] }
  0x2c   :  { %159 = vmatpush.msra.mxu1 %v99_v23  ;;  %215 = vmatpush.msra.mxu2 %v180_v54  ;;  %v170_v5 = vld [vmem:[#allocation10] sm:$0xff]  ;;  %v92_v6 = vld [vmem:[#allocation9 + $0x10] sm:$0xff] }
  0x2d   :  { %237 = vmatpush.msra.mxu3 %v177_v24  ;;  %138 = vmatpush.msra.mxu0 %v100_v55  ;;  %v90_v7 = vld [vmem:[#allocation9] sm:$0xff] }
  0x2e   :  { %160 = vmatpush.msra.mxu1 %v97_v25  ;;  %216 = vmatpush.msra.mxu2 %v178_v57 }
  0x2f   :  { %238 = vmatpush.msra.mxu3 %v175_v26  ;;  %139 = vmatpush.msra.mxu0 %v98_v58 }
  0x30   :  { %161 = vmatpush.msra.mxu1 %v95_v27  ;;  %217 = vmatpush.msra.mxu2 %v176_v60 }
  0x31   :  { %239 = vmatpush.msra.mxu3 %v173_v28  ;;  %140 = vmatpush.msra.mxu0 %v96_v2 }
  0x32   :  { %162 = vmatpush.msra.mxu1 %v93_v29  ;;  %218 = vmatpush.msra.mxu2 %v174_v62 }
  0x33   :  { %240 = vmatpush.msra.mxu3 %v171_v30  ;;  %141 = vmatpush.msra.mxu0 %v94_v4 }
  0x34   :  { %163 = vmatpush.msra.mxu1 %v91_v31  ;;  %241 = vmatmul.f32.vlgmr.msra.gmra.mxu3 %v527_v32 }
  0x35   :  { %164 = vmatmul.f32.vlgmr.msra.gmra.mxu1 %v529_v33  ;;  %219 = vmatpush.msra.mxu2 %v172_v3 }
  0x36   :  { %142 = vmatpush.msra.mxu0 %v92_v6 }
  0x37   :  { %220 = vmatpush.msra.mxu2 %v170_v5 }
  0x38   :  { %221 = vmatmul.f32.vlgmr.msra.gmra.mxu2 %v527_v32  ;;  %143 = vmatpush.msra.mxu0 %v90_v7 }
  0x39   :  { %144 = vmatmul.f32.vlgmr.msra.gmra.mxu0 %v529_v33 }
  0xb2   :  { %v165_v61 = vpop.f32.mrf.mxu1 }
  0xb3   :  { %v166_v63 = vadd.f32 %v165_v61, %v125_v59 }
  0xb6   :  { %v145_v13 = vpop.f32.mrf.mxu0 }
  0xb7   :  { %v242_v0 = vpop.f32.mrf.mxu3  ;;  %v146_v14 = vadd.f32 %v145_v13, %v124_v12 }
  0xb8   :  { %v246_v1 = vadd.f32 %v242_v0, %v166_v63 }
  0xba   :  { %256 = vmax.xlane.f32.xlu0 %v246_v1 }
  0xbb   :  { %v222_v15 = vpop.f32.mrf.mxu2 }
  0xbc   :  { %v245_v16 = vadd.f32 %v222_v15, %v146_v14 }
  0xbe   :  { %270 = vst [vmem:[#allocation13] sm:$0xff] %v245_v16 }
  0xbf   :  { %292 = dma.vmem_to_hbm [thread:$0]  %s288_s17, 128, %s290_s20, [#allocation14]  }
 0x12d   :  { %v257_v8 = vpop.xlane.xlu0 %256 }
 0x12e   :  { %v258_v9 = vsub.f32 %v246_v1, %v257_v8 }
 0x130   :  { %v259_v10 = vmul.f32 1.442695, %v258_v9 }
 0x132   :  { %314 = vpow2.f32 %v259_v10 }
 0x138   :  { %v315_v11 = vpop.eup %314 }
 0x139   :  { %261 = vadd.xlane.f32.xlu0 %v315_v11 }
 0x1ac   :  { %v262_v17 = vpop.xlane.xlu0 %261 }
 0x1ad   :  { %316 = vlog2.f32 %v262_v17 }
 0x1b3   :  { %v317_v18 = vpop.eup %316 }
 0x1b4   :  { %v264_v19 = vmul.f32 0.6931472, %v317_v18 }
 0x1b6   :  { %v265_v20 = vsub.f32 %v258_v9, %v264_v19 }
 0x1b8   :  { %266 = vst [vmem:[#allocation12] sm:$0xff] %v265_v20 }
 0x1b9   :  { %281 = dma.vmem_to_hbm [thread:$0]  %s277_s22, 128, %s279_s25, [#allocation6]  }
 0x1ba   :  { %468 = dma.done.wait [#allocation6], 128  }
 0x1bb   :  { %469 = vsyncadd [#allocation6], 4294967168 }
 0x1bc   :  { %470 = dma.done.wait [#allocation14], 128  }
 0x1bd   :  { %471 = vsyncadd [#allocation14], 4294967168 }
 0x1be   :  { %301 = vsyncpa [#allocation5], 1 }
 0x1bf   :  { %302 = vsyncpa [#allocation8], 1 }
 0x1c0   :  { %303 = vsyncpa [#allocation11], 1 }
 0x1c1   :  { %304 = vsyncpa [#allocation6], 1 }
 0x1c2   :  { %305 = vsyncpa [#allocation14], 1 }

</bundles_post_ra>
